<compile_context>
chip_gen: v6e
topology: v6e:2x2x1
jax: 0.10.0
libtpu: 0.0.40
codegen_flags: <defaults>
</compile_context>

<pallas_src>
import functools

import jax
import jax.numpy as jnp
import numpy as np
from jax.experimental import pallas as pl
from jax.experimental.pallas import tpu as pltpu


# --------------------------------------------------------------------------- #
# Kernel body (purely elementwise on lane-dense (rows, W) tiles).
# --------------------------------------------------------------------------- #
def _wsl1_kernel(*refs, beta, has_weights):
    if has_weights:
        x_ref, t_ref, w_ref, o_ref = refs
    else:
        x_ref, t_ref, o_ref = refs

    x = x_ref[...]
    t = t_ref[...]
    # target = where(isnan(target), input, target)
    t = jnp.where(jnp.isnan(t), x, t)
    n = jnp.abs(x - t)
    if beta < 1e-5:
        loss = n
    else:
        # 0.5 * n^2 / beta rewritten as n*n*(0.5/beta): plain VPU multiply.
        loss = jnp.where(n < beta, n * n * (0.5 / beta), n - 0.5 * beta)
    if has_weights:
        loss = loss * w_ref[...]
    o_ref[...] = loss.astype(o_ref.dtype)


# --------------------------------------------------------------------------- #
# Pure-JAX fused path (used for tiny / ragged inputs; also the test reference).
# --------------------------------------------------------------------------- #
def _reference(inp, tgt, weights, beta):
    tgt = jnp.where(jnp.isnan(tgt), inp, tgt)
    n = jnp.abs(inp - tgt)
    if beta < 1e-5:
        loss = n
    else:
        loss = jnp.where(n < beta, 0.5 * n * n / beta, n - 0.5 * beta)
    if weights is not None:
        loss = loss * weights[:, :, None]
    return loss


# --------------------------------------------------------------------------- #
# Per-generation tiling configuration.
# --------------------------------------------------------------------------- #
def _device_config():
    try:
        kind = jax.devices()[0].device_kind.lower()
    except Exception:
        kind = ""
    if "v7" in kind:
        # 2 TensorCores: shard the row grid across them; 64 MiB physical VMEM.
        return dict(block_bytes=4 << 20, vmem_cap=48 << 20,
                    row_semantics=getattr(pltpu, "CORE_PARALLEL", "parallel"))
    if "v6" in kind:
        return dict(block_bytes=4 << 20, vmem_cap=96 << 20,
                    row_semantics="parallel")
    if "v5e" in kind or "v5 lite" in kind or "v5lite" in kind:
        return dict(block_bytes=2 << 20, vmem_cap=96 << 20,
                    row_semantics="parallel")
    # Unknown generation: previously proven-safe configuration.
    return dict(block_bytes=1 << 20, vmem_cap=None, row_semantics="parallel")


# --------------------------------------------------------------------------- #
# Wrapper.
# --------------------------------------------------------------------------- #
def weighted_smooth_l1_loss(inp, tgt, weights=None, *, beta=1.0 / 9.0,
                            block_rows=None, min_pallas_elems=1 << 16,
                            weights_in_bf16=False):
    """Pallas implementation of WeightedSmoothL1Loss.forward (no reduction).

    inp, tgt: (B, A, C) float32
    weights:  (B, A)    float32 or None
    returns:  (B, A, C) float32
    """
    B, A, C = inp.shape
    assert tgt.shape == (B, A, C)
    if weights is not None:
        assert weights.shape[0] == B and weights.shape[1] == A
    dtype = inp.dtype
    itemsize = jnp.dtype(dtype).itemsize
    N = B * A * C

    # Fast path: tiny inputs (launch/plumbing dominates) or element counts with
    # no free lane-dense reshape (N % 128 != 0).  A fused XLA elementwise pass
    # is traffic-optimal here and avoids every pad/unpad copy.
    if N < min_pallas_elems or N % 128 != 0:
        return _reference(inp, tgt, weights, beta)

    # Widest lane-dense row width that divides N -> reshape is a free view.
    lanes = next(w for w in (512, 256, 128) if N % w == 0)
    R = N // lanes

    cfg = _device_config()
    if block_rows is None:
        block_rows = max(8, cfg["block_bytes"] // (lanes * itemsize))
    tr = R if R <= block_rows else block_rows
    grid = (pl.cdiv(R, tr),)  # ragged last row-tile: OOB stores masked by Pallas

    streams = [inp.reshape(R, lanes), tgt.reshape(R, lanes)]
    if weights is not None:
        # TODO(synk): an in-kernel per-anchor weight gather (lane index // C on a
        # small per-block weight slice) would remove this broadcast's ~2N words
        # of HBM traffic, but a 2-D dynamic lane gather is not reliably
        # lowerable today; allow_input_fusion below lets the broadcast fuse
        # into the operand instead of a standalone XLA pass.
        w_dtype = jnp.bfloat16 if weights_in_bf16 else dtype
        w_full = jnp.broadcast_to(weights[:, :, None], (B, A, C)).astype(w_dtype)
        streams.append(w_full.reshape(R, lanes))
    n_in = len(streams)

    spec = pl.BlockSpec((tr, lanes), lambda i: (i, 0))
    kernel = functools.partial(_wsl1_kernel, beta=float(beta),
                               has_weights=weights is not None)

    block_bytes = tr * lanes * itemsize
    if cfg["vmem_cap"] is None:
        vmem_limit = None
    else:
        needed = (n_in + 1) * 2 * block_bytes + (16 << 20)   # dbl-buffered + slack
        vmem_limit = int(min(cfg["vmem_cap"], max(needed, 32 << 20)))

    out2d = pl.pallas_call(
        kernel,
        out_shape=jax.ShapeDtypeStruct((R, lanes), dtype),
        grid_spec=pltpu.PrefetchScalarGridSpec(
            num_scalar_prefetch=0,
            grid=grid,
            in_specs=[spec] * n_in,
            out_specs=spec,
        ),
        compiler_params=pltpu.CompilerParams(
            dimension_semantics=(cfg["row_semantics"],),
            vmem_limit_bytes=vmem_limit,
            allow_input_fusion=[True] * n_in,
        ),
        cost_estimate=pl.CostEstimate(
            flops=8 * N,
            transcendentals=0,
            bytes_accessed=(n_in + 1) * N * itemsize,
        ),
    )(*streams)

    return out2d.reshape(B, A, C)


# --------------------------------------------------------------------------- #
# Self-test.
# --------------------------------------------------------------------------- #
if __name__ == "__main__":
    beta = 1.0 / 9.0
    base_key = jax.random.PRNGKey(0)
    key1, key3, key4 = jax.random.split(base_key, 3)

    def make_inputs(key, B, A, C):
        k1, k2, k3, k4 = jax.random.split(key, 4)
        inp = jax.random.normal(k1, (B, A, C), dtype=jnp.float32)
        tgt = jax.random.normal(k2, (B, A, C), dtype=jnp.float32)
        # Inject NaNs into the target to exercise the isnan path.
        nan_mask = jax.random.bernoulli(k3, 0.1, (B, A, C))
        tgt = jnp.where(nan_mask, jnp.nan, tgt)
        w = jax.random.uniform(k4, (B, A), dtype=jnp.float32)
        return inp, tgt, w

    # 1) Weighted Pallas path: N = 2*512*7 = 7168 = 14*512 -> free lane-dense
    #    reshape, single (14, 512) block.
    inp, tgt, w = make_inputs(key1, 2, 512, 7)
    out = jax.block_until_ready(
        weighted_smooth_l1_loss(inp, tgt, w, beta=beta, min_pallas_elems=0))
    ref = _reference(inp, tgt, w, beta)
    np.testing.assert_allclose(np.asarray(out), np.asarray(ref),
                               rtol=1e-6, atol=1e-6)
    assert not np.isnan(np.asarray(out)).any()

    # 2) weights=None Pallas path.
    out_nw = jax.block_until_ready(
        weighted_smooth_l1_loss(inp, tgt, None, beta=beta, min_pallas_elems=0))
    np.testing.assert_allclose(np.asarray(out_nw),
                               np.asarray(_reference(inp, tgt, None, beta)),
                               rtol=1e-6, atol=1e-6)

    # 3) Multi-block Pallas path with a ragged last row-tile:
    #    N = 2*192*7 = 2688 = 21*128 -> lanes=128, R=21, block_rows=8 -> grid=3.
    inp3, tgt3, w3 = make_inputs(key3, 2, 192, 7)
    out3 = jax.block_until_ready(
        weighted_smooth_l1_loss(inp3, tgt3, w3, beta=beta,
                                min_pallas_elems=0, block_rows=8))
    np.testing.assert_allclose(np.asarray(out3),
                               np.asarray(_reference(inp3, tgt3, w3, beta)),
                               rtol=1e-6, atol=1e-6)

    # 4) Ragged element count (N % 128 != 0) -> fused pure-JAX fast path
    #    (no pad/unpad copies ever happen).
    inp4, tgt4, w4 = make_inputs(key4, 2, 300, 7)
    out4 = jax.block_until_ready(
        weighted_smooth_l1_loss(inp4, tgt4, w4, beta=beta))
    np.testing.assert_allclose(np.asarray(out4),
                               np.asarray(_reference(inp4, tgt4, w4, beta)),
                               rtol=1e-6, atol=1e-6)

    print("KERNEL_OK")
</pallas_src>

<mosaic_0001>
module attributes {stable_mosaic.version = 11 : i64} {
  func.func @_wsl1_kernel(%arg0: i32, %arg1: memref<14x512xf32, #tpu.memory_space<vmem>>, %arg2: memref<14x512xf32, #tpu.memory_space<vmem>>, %arg3: memref<14x512xf32, #tpu.memory_space<vmem>>, %arg4: memref<14x512xf32, #tpu.memory_space<vmem>>) attributes {dimension_semantics = [#tpu.dimension_semantics<parallel>], iteration_bounds = array<i64: 1>, scalar_prefetch = 0 : i64, scratch_operands = 0 : i64, tpu.core_type = #tpu.core_type<tc>, window_params = [{transform_indices = @transform_0, window_bounds = array<i64: 14, 512>}, {transform_indices = @transform_1, window_bounds = array<i64: 14, 512>}, {transform_indices = @transform_2, window_bounds = array<i64: 14, 512>}, {transform_indices = @transform_3, window_bounds = array<i64: 14, 512>}]} {
    %c0 = arith.constant 0 : index
    %c0_0 = arith.constant 0 : index
    %0 = vector.load %arg1[%c0, %c0_0] : memref<14x512xf32, #tpu.memory_space<vmem>>, vector<14x512xf32>
    %c0_1 = arith.constant 0 : index
    %c0_2 = arith.constant 0 : index
    %1 = vector.load %arg2[%c0_1, %c0_2] : memref<14x512xf32, #tpu.memory_space<vmem>>, vector<14x512xf32>
    %2 = arith.cmpf one, %1, %1 : vector<14x512xf32>
    %3 = arith.select %2, %0, %1 : vector<14x512xi1>, vector<14x512xf32>
    %4 = arith.subf %0, %3 : vector<14x512xf32>
    %5 = math.absf %4 : vector<14x512xf32>
    %cst = arith.constant 0.111111112 : f32
    %6 = vector.broadcast %cst : f32 to vector<14x512xf32>
    %7 = arith.cmpf olt, %5, %6 : vector<14x512xf32>
    %8 = arith.mulf %5, %5 : vector<14x512xf32>
    %cst_3 = arith.constant 4.500000e+00 : f32
    %9 = vector.broadcast %cst_3 : f32 to vector<14x512xf32>
    %10 = arith.mulf %8, %9 : vector<14x512xf32>
    %cst_4 = arith.constant 0.055555556 : f32
    %11 = vector.broadcast %cst_4 : f32 to vector<14x512xf32>
    %12 = arith.subf %5, %11 : vector<14x512xf32>
    %13 = arith.select %7, %10, %12 : vector<14x512xi1>, vector<14x512xf32>
    %c0_5 = arith.constant 0 : index
    %c0_6 = arith.constant 0 : index
    %14 = vector.load %arg3[%c0_5, %c0_6] : memref<14x512xf32, #tpu.memory_space<vmem>>, vector<14x512xf32>
    %15 = arith.mulf %13, %14 : vector<14x512xf32>
    %c0_7 = arith.constant 0 : index
    %c0_8 = arith.constant 0 : index
    %16 = vector.load %arg4[%c0_7, %c0_8] : memref<14x512xf32, #tpu.memory_space<vmem>>, vector<14x512xf32>
    tpu.vector_store %arg4[%c0_7, %c0_8], %15 {strides = array<i32>} : memref<14x512xf32, #tpu.memory_space<vmem>>, vector<14x512xf32>,
    return
  }
  func.func @transform_0(%arg0: i32) -> (i32, i32) {
    %c0_i32 = arith.constant 0 : i32
    %c0_i32_0 = arith.constant 0 : i32
    return %arg0, %c0_i32 : i32, i32
  }
  func.func @transform_1(%arg0: i32) -> (i32, i32) {
    %c0_i32 = arith.constant 0 : i32
    %c0_i32_0 = arith.constant 0 : i32
    return %arg0, %c0_i32 : i32, i32
  }
  func.func @transform_2(%arg0: i32) -> (i32, i32) {
    %c0_i32 = arith.constant 0 : i32
    %c0_i32_0 = arith.constant 0 : i32
    return %arg0, %c0_i32 : i32, i32
  }
  func.func @transform_3(%arg0: i32) -> (i32, i32) {
    %c0_i32 = arith.constant 0 : i32
    %c0_i32_0 = arith.constant 0 : i32
    return %arg0, %c0_i32 : i32, i32
  }
}

</mosaic_0001>

<bundles_post_ra>
// kernel: tpu_custom_call.1
= control target key start
LH: loop header
LB: loop body
LE: loop exit
PB: predicated region body
PF: predicated region fallthrough
CT: control target
= control target key end

     0   :  { %8 = vsyncpa [#allocation3], 0  ;;  %s341_s0 = inlined_call_operand.hbm [shape: f32[14,512], index: 0, kind: input, shape index: {}]   ;;  %s342_s1 = inlined_call_operand.hbm [shape: f32[14,512], index: 1, kind: input, shape index: {}]   ;;  %s343_s2 = inlined_call_operand.hbm [shape: f32[14,512], index: 2, kind: input, shape index: {}]   ;;  %s344_s3 = inlined_call_operand.hbm [shape: f32[14,512], index: 3, kind: output, shape index: {}]  }
   0x1   :  { %9 = vsyncpa [#allocation6], 0 }
   0x2   :  { %10 = vsyncpa [#allocation4], 0  ;;  %s286_s12 = smov [#allocation5]   ;;  %s287_s14 = smov [#allocation2]  }
   0x3   :  { %s28_s13 = sshll.u32 %s286_s12, 4  ;;  %s16_s15 = sshll.u32 %s287_s14, 4  ;;  %s29_s13 = int_to_ptr.vmem [resolvable:$true] %s28_s13  ;;  %s17_s15 = int_to_ptr.vmem [resolvable:$true] %s16_s15 }
   0x4   :  { %s208_s16 = scalar_lea.vmem %s29_s13, 1024  ;;  %p213_p1 = scmp.lt.s32.totalorder %s29_s13, %s29_s13 }
   0x5   :  { %p209_p0 = scmp.ne.s32.totalorder %s29_s13, %s208_s16  ;;  %p214_p2 = scmp.lt.s32.totalorder %s208_s16, %s208_s16 }
   0x7   :  { %p215_p3 = por %p214_p2, %p213_p1 }
   0x9   :  { %p216_p4 = pnand %p215_p3, %p209_p0 }
   0xb   :  { %219 = shalt.err (!%p216_p4)
}
   0xc   :  { %s288_s17 = smov 512   ;;  %s289_s18 = smov 32  }
   0xd   :  { %34 = dma.hbm_to_vmem [thread:$0]  %s342_s1, 1024, %s29_s13, [#allocation6], %s288_s17, %s288_s17, %s289_s18  }
   0xe   :  { %s228_s21 = scalar_lea.vmem %s17_s15, 1024  ;;  %p233_p6 = scmp.lt.s32.totalorder %s17_s15, %s17_s15 }
   0xf   :  { %p229_p5 = scmp.ne.s32.totalorder %s17_s15, %s228_s21  ;;  %p234_p7 = scmp.lt.s32.totalorder %s228_s21, %s228_s21 }
  0x11   :  { %p235_p8 = por %p234_p7, %p233_p6 }
  0x13   :  { %p236_p9 = pnand %p235_p8, %p229_p5 }
  0x15   :  { %239 = shalt.err (!%p236_p9)
}
  0x16   :  { %22 = dma.hbm_to_vmem [thread:$0]  %s341_s0, 1024, %s17_s15, [#allocation3], %s288_s17, %s288_s17, %s289_s18  }
  0x17   :  { %s290_s24 = smov [#allocation7]  }
  0x18   :  { %s40_s25 = sshll.u32 %s290_s24, 4  ;;  %s41_s25 = int_to_ptr.vmem [resolvable:$true] %s40_s25 }
  0x19   :  { %s248_s26 = scalar_lea.vmem %s41_s25, 1024  ;;  %p253_p11 = scmp.lt.s32.totalorder %s41_s25, %s41_s25 }
  0x1a   :  { %p249_p10 = scmp.ne.s32.totalorder %s41_s25, %s248_s26  ;;  %p254_p12 = scmp.lt.s32.totalorder %s248_s26, %s248_s26 }
  0x1c   :  { %p255_p13 = por %p254_p12, %p253_p11 }
  0x1e   :  { %p256_p0 = pnand %p255_p13, %p249_p10 }
  0x20   :  { %259 = shalt.err (!%p256_p0)
}
  0x21   :  { %46 = dma.hbm_to_vmem [thread:$0]  %s343_s2, 1024, %s41_s25, [#allocation6], %s288_s17, %s288_s17, %s289_s18  }
  0x22   :  { %280 = dma.done.wait [#allocation3], 1024  }
  0x23   :  { %281 = vsyncadd [#allocation3], 4294966272 }
  0x24   :  { %282 = dma.done.wait [#allocation6], 2048  }
  0x25   :  { %283 = vsyncadd [#allocation6], 4294965248  ;;  %v56_v0 = vld [vmem:[#allocation2] sm:$0xff]  ;;  %v57_v2 = vld [vmem:[#allocation2 + $0x8] sm:$0xff]  ;;  %s291_s0 = smov [#allocation8]  }
  0x26   :  { %v64_v1 = vld [vmem:[#allocation5] sm:$0xff]  ;;  %v65_v3 = vld [vmem:[#allocation5 + $0x8] sm:$0xff]  ;;  %v58_v5 = vld [vmem:[#allocation2 + $0x10] sm:$0xff]  ;;  %s173_s2 = sshll.u32 %s291_s0, 4  ;;  %s174_s2 = int_to_ptr.vmem [resolvable:$true] %s173_s2 }
  0x27   :  { %vm72_vm0 = vcmp.ne.f32.partialorder %v64_v1, %v64_v1  ;;  %vm73_vm1 = vcmp.ne.f32.partialorder %v65_v3, %v65_v3  ;;  %v66_v6 = vld [vmem:[#allocation5 + $0x10] sm:$0xff]  ;;  %v59_v9 = vld [vmem:[#allocation2 + $0x18] sm:$0xff]  ;;  %v60_v13 = vld [vmem:[#allocation2 + $0x20] sm:$0x3f]  ;;  %s260_s28 = scalar_lea.vmem %s174_s2, 1024  ;;  %p265_p2 = scmp.lt.s32.totalorder %s174_s2, %s174_s2 }
  0x28   :  { %v80_v4 = vsel %vm72_vm0, %v56_v0, %v64_v1  ;;  %v81_v8 = vsel %vm73_vm1, %v57_v2, %v65_v3  ;;  %vm74_vm2 = vcmp.ne.f32.partialorder %v66_v6, %v66_v6  ;;  %v67_v10 = vld [vmem:[#allocation5 + $0x18] sm:$0xff]  ;;  %v68_v14 = vld [vmem:[#allocation5 + $0x20] sm:$0x3f]  ;;  %v69_v18 = vld [vmem:[#allocation5 + $0x28] sm:$0x3f]  ;;  %p261_p1 = scmp.ne.s32.totalorder %s174_s2, %s260_s28  ;;  %p266_p3 = scmp.lt.s32.totalorder %s260_s28, %s260_s28 }
  0x29   :  { %v88_v7 = vsub.f32 %v56_v0, %v80_v4  ;;  %v89_v11 = vsub.f32 %v57_v2, %v81_v8  ;;  %v82_v12 = vsel %vm74_vm2, %v58_v5, %v66_v6  ;;  %vm75_vm3 = vcmp.ne.f32.partialorder %v67_v10, %v67_v10  ;;  %v61_v22 = vld [vmem:[#allocation2 + $0x28] sm:$0x3f]  ;;  %v144_v30 = vld [vmem:[#allocation7] sm:$0xff]  ;;  %v146_v39 = vld [vmem:[#allocation7 + $0x10] sm:$0xff] }
  0x2a   :  { %v90_v16 = vsub.f32 %v58_v5, %v82_v12  ;;  %v83_v17 = vsel %vm75_vm3, %v59_v9, %v67_v10  ;;  %vm76_vm4 = vcmp.ne.f32.partialorder %v68_v14, %v68_v14  ;;  %vm77_vm5 = vcmp.ne.f32.partialorder %v69_v18, %v69_v18  ;;  %v145_v34 = vld [vmem:[#allocation7 + $0x8] sm:$0xff]  ;;  %v62_v42 = vld [vmem:[#allocation2 + $0x30] sm:$0x3f]  ;;  %v147_v47 = vld [vmem:[#allocation7 + $0x18] sm:$0xff]  ;;  %p267_p4 = por %p266_p3, %p265_p2 }
  0x2b   :  { %v96_v15 = vand.u32 2147483647, %v88_v7  ;;  %v97_v19 = vand.u32 2147483647, %v89_v11  ;;  %v91_v20 = vsub.f32 %v59_v9, %v83_v17  ;;  %v84_v21 = vsel %vm76_vm4, %v60_v13, %v68_v14  ;;  %v70_v43 = vld [vmem:[#allocation5 + $0x30] sm:$0x3f] }
  0x2c   :  { %v98_v25 = vand.u32 2147483647, %v90_v16  ;;  %v92_v40 = vsub.f32 %v60_v13, %v84_v21  ;;  %v85_v41 = vsel %vm77_vm5, %v61_v22, %v69_v18  ;;  %vm78_vm10 = vcmp.ne.f32.partialorder %v70_v43, %v70_v43  ;;  %v71_v56 = vld [vmem:[#allocation5 + $0x38] sm:$0x3f]  ;;  %v148_v1 = vld [vmem:[#allocation7 + $0x20] sm:$0x3f]  ;;  %p268_p5 = pnand %p267_p4, %p261_p1 }
  0x2d   :  { %vm104_vm6 = vcmp.lt.f32.partialorder %v96_v15, 0.11111111  ;;  %v112_v23 = vmul.f32 %v96_v15, %v96_v15  ;;  %v186_v24 = vadd.f32 -0.055555556, %v96_v15  ;;  %vm105_vm7 = vcmp.lt.f32.partialorder %v97_v19, 0.11111111 }
  0x2e   :  { %v113_v26 = vmul.f32 %v97_v19, %v97_v19  ;;  %v187_v27 = vadd.f32 -0.055555556, %v97_v19  ;;  %v99_v28 = vand.u32 2147483647, %v91_v20  ;;  %vm106_vm8 = vcmp.lt.f32.partialorder %v98_v25, 0.11111111 }
  0x2f   :  { %v120_v29 = vmul.f32 4.5, %v112_v23  ;;  %v114_v31 = vmul.f32 %v98_v25, %v98_v25  ;;  %v188_v32 = vadd.f32 -0.055555556, %v98_v25  ;;  %v93_v48 = vsub.f32 %v61_v22, %v85_v41  ;;  %v63_v60 = vld [vmem:[#allocation2 + $0x38] sm:$0x3f] }
  0x30   :  { %v121_v33 = vmul.f32 4.5, %v113_v26  ;;  %vm107_vm9 = vcmp.lt.f32.partialorder %v99_v28, 0.11111111  ;;  %v115_v35 = vmul.f32 %v99_v28, %v99_v28  ;;  %v189_v36 = vadd.f32 -0.055555556, %v99_v28 }
  0x31   :  { %v136_v37 = vsel %vm104_vm6, %v120_v29, %v186_v24  ;;  %v122_v38 = vmul.f32 4.5, %v114_v31  ;;  %v100_v51 = vand.u32 2147483647, %v92_v40  ;;  %v101_v54 = vand.u32 2147483647, %v93_v48 }
  0x32   :  { %v152_v44 = vmul.f32 %v144_v30, %v136_v37  ;;  %v137_v45 = vsel %vm105_vm7, %v121_v33, %v187_v27  ;;  %v123_v46 = vmul.f32 4.5, %v115_v35  ;;  %v86_v55 = vsel %vm78_vm10, %v62_v42, %v70_v43  ;;  %v149_v3 = vld [vmem:[#allocation7 + $0x28] sm:$0x3f]  ;;  %v150_v15 = vld [vmem:[#allocation7 + $0x30] sm:$0x3f] }
  0x33   :  { %v153_v49 = vmul.f32 %v145_v34, %v137_v45  ;;  %v138_v50 = vsel %vm106_vm8, %v122_v38, %v188_v32  ;;  %v116_v58 = vmul.f32 %v100_v51, %v100_v51  ;;  %v190_v59 = vadd.f32 -0.055555556, %v100_v51  ;;  %v151_v21 = vld [vmem:[#allocation7 + $0x38] sm:$0x3f] }
  0x34   :  { %160 = vst [vmem:[#allocation8] sm:$0xff] %v152_v44  ;;  %v154_v52 = vmul.f32 %v146_v39, %v138_v50  ;;  %v139_v53 = vsel %vm107_vm9, %v123_v46, %v189_v36  ;;  %vm108_vm11 = vcmp.lt.f32.partialorder %v100_v51, 0.11111111  ;;  %v117_v61 = vmul.f32 %v101_v54, %v101_v54 }
  0x35   :  { %161 = vst [vmem:[#allocation8 + $0x8] sm:$0xff] %v153_v49  ;;  %v155_v57 = vmul.f32 %v147_v47, %v139_v53  ;;  %v191_v62 = vadd.f32 -0.055555556, %v101_v54  ;;  %v94_v63 = vsub.f32 %v62_v42, %v86_v55  ;;  %v124_v0 = vmul.f32 4.5, %v116_v58 }
  0x36   :  { %162 = vst [vmem:[#allocation8 + $0x10] sm:$0xff] %v154_v52  ;;  %vm109_vm12 = vcmp.lt.f32.partialorder %v101_v54, 0.11111111  ;;  %vm79_vm13 = vcmp.ne.f32.partialorder %v71_v56, %v71_v56  ;;  %v125_v2 = vmul.f32 4.5, %v117_v61 }
  0x37   :  { %163 = vst [vmem:[#allocation8 + $0x18] sm:$0xff] %v155_v57  ;;  %v102_v4 = vand.u32 2147483647, %v94_v63  ;;  %v87_v5 = vsel %vm79_vm13, %v63_v60, %v71_v56  ;;  %v140_v6 = vsel %vm108_vm11, %v124_v0, %v190_v59 }
  0x38   :  { %v95_v7 = vsub.f32 %v63_v60, %v87_v5  ;;  %v156_v8 = vmul.f32 %v148_v1, %v140_v6  ;;  %v141_v9 = vsel %vm109_vm12, %v125_v2, %v191_v62 }
  0x39   :  { %v118_v10 = vmul.f32 %v102_v4, %v102_v4  ;;  %v157_v11 = vmul.f32 %v149_v3, %v141_v9  ;;  %vm110_vm14 = vcmp.lt.f32.partialorder %v102_v4, 0.11111111  ;;  %v192_v12 = vadd.f32 -0.055555556, %v102_v4 }
  0x3a   :  { %v103_v13 = vand.u32 2147483647, %v95_v7  ;;  %164 = vst [vmem:[#allocation8 + $0x20] sm:$0x3f] %v156_v8 }
  0x3b   :  { %v126_v14 = vmul.f32 4.5, %v118_v10  ;;  %165 = vst [vmem:[#allocation8 + $0x28] sm:$0x3f] %v157_v11 }
  0x3c   :  { %v119_v16 = vmul.f32 %v103_v13, %v103_v13  ;;  %v193_v17 = vadd.f32 -0.055555556, %v103_v13  ;;  %vm111_vm15 = vcmp.lt.f32.partialorder %v103_v13, 0.11111111 }
  0x3d   :  { %v142_v18 = vsel %vm110_vm14, %v126_v14, %v192_v12 }
  0x3e   :  { %v158_v19 = vmul.f32 %v150_v15, %v142_v18  ;;  %v127_v20 = vmul.f32 4.5, %v119_v16 }
  0x40   :  { %166 = vst [vmem:[#allocation8 + $0x30] sm:$0x3f] %v158_v19  ;;  %v143_v22 = vsel %vm111_vm15, %v127_v20, %v193_v17 }
  0x41   :  { %v159_v23 = vmul.f32 %v151_v21, %v143_v22 }
  0x43   :  { %167 = vst [vmem:[#allocation8 + $0x38] sm:$0x3f] %v159_v23 }
  0x44   :  { %271 = shalt.err (!%p268_p5)
}
  0x45   :  { %179 = dma.vmem_to_hbm [thread:$0]  %s174_s2, 1024, %s344_s3, [#allocation4], %s288_s17, %s288_s17, %s289_s18  }
  0x46   :  { %284 = dma.done.wait [#allocation4], 1024  }
  0x47   :  { %285 = vsyncadd [#allocation4], 4294966272 }
  0x48   :  { %183 = vsyncpa [#allocation3], 1 }
  0x49   :  { %184 = vsyncpa [#allocation6], 1 }
  0x4a   :  { %185 = vsyncpa [#allocation4], 1 }

</bundles_post_ra>
